<compile_context>
chip_gen: v6e
topology: v6e:2x2x1
jax: 0.10.0
libtpu: 0.0.40
codegen_flags: <defaults>
</compile_context>

<pallas_src>
import math

import numpy as np
import jax
import jax.numpy as jnp
from jax import lax
from jax.experimental import pallas as pl
from jax.experimental.pallas import tpu as pltpu


# ----------------------------------------------------------------------------
# 1-D interpolation matrices (host-side numpy, built once per call)
# ----------------------------------------------------------------------------
def _interp_matrix(in_size: int, out_size: int, mode: str, scale=None) -> np.ndarray:
    """1-D interpolation matrix (out_size, in_size) matching PyTorch semantics.

    When `scale` (the user scale_factor) is given, coordinates use 1/scale
    (modern PyTorch behaviour with scale_factor + align_corners=False);
    otherwise in_size/out_size is used.  Identical for integer scales.
    """
    ratio = (1.0 / float(scale)) if (scale is not None and scale > 0) else (in_size / out_size)
    dst = np.arange(out_size, dtype=np.float64)
    if mode == "bilinear":
        # align_corners=False half-pixel convention, clamped at 0 (PyTorch).
        src = np.maximum((dst + 0.5) * ratio - 0.5, 0.0)
        x0 = np.minimum(np.floor(src).astype(np.int64), in_size - 1)
        x1 = np.minimum(x0 + 1, in_size - 1)
        lam = src - x0
        w = np.zeros((out_size, in_size), np.float32)
        rows = np.arange(out_size)
        np.add.at(w, (rows, x0), (1.0 - lam).astype(np.float32))
        np.add.at(w, (rows, x1), lam.astype(np.float32))
        return w
    elif mode == "nearest":
        # PyTorch legacy 'nearest' (not 'nearest-exact').
        src = np.minimum(np.floor(dst * ratio).astype(np.int64), in_size - 1)
        w = np.zeros((out_size, in_size), np.float32)
        w[np.arange(out_size), src] = 1.0
        return w
    else:
        # TODO(synk): bicubic / area modes not implemented.
        raise NotImplementedError(f"mode={mode}")


# ----------------------------------------------------------------------------
# Kernels
# ----------------------------------------------------------------------------
def _fused_kernel(cdtype):
    """Small-plane path: row pass for all TB planes is ONE block-diagonal MXU
    matmul, chained directly into the fused column matmul (no scratch)."""

    def kernel(x_ref, whbd_ref, wwt_ref, o_ref):
        rp = jnp.dot(whbd_ref[...], x_ref[...],
                     preferred_element_type=jnp.float32)          # (TB*Ho, W)
        out = jnp.dot(rp.astype(cdtype), wwt_ref[...],
                      preferred_element_type=jnp.float32)         # (TB*Ho, Wo)
        o_ref[...] = out.astype(o_ref.dtype)

    return kernel


def _looped_kernel(tb: int, h: int, ho: int):
    """Large-plane path: per-plane row matmuls under lax.fori_loop (bounded
    live ranges) into a VMEM scratch, then one fused column matmul."""

    def kernel(x_ref, wh_ref, wwt_ref, o_ref, tmp_ref):
        wh = wh_ref[...]                                          # (Ho, H) hoisted

        def body(b, carry):
            xs = pl.multiple_of(b * h, h)
            rp = jnp.dot(wh, x_ref[pl.ds(xs, h), :],
                         preferred_element_type=jnp.float32)      # (Ho, W)
            ts = pl.multiple_of(b * ho, ho)
            tmp_ref[pl.ds(ts, ho), :] = rp.astype(tmp_ref.dtype)
            return carry

        lax.fori_loop(0, tb, body, None, unroll=(True if tb <= 8 else 4))

        # Column pass: ONE fused MXU matmul across all TB planes.
        out = jnp.dot(tmp_ref[...], wwt_ref[...],
                      preferred_element_type=jnp.float32)         # (TB*Ho, Wo)
        o_ref[...] = out.astype(o_ref.dtype)

    return kernel


# ----------------------------------------------------------------------------
# Per-generation VMEM budgeting and plane-batch (TB) selection
# ----------------------------------------------------------------------------
def _vmem_budget():
    """(soft tiling budget, vmem_limit_bytes) chosen per TPU generation."""
    cap = None
    try:
        cap = int(pltpu.get_tpu_info().vmem_capacity_bytes)
    except Exception:
        try:
            kind = jax.devices()[0].device_kind.lower()
            cap = 64 * 2**20 if "v7" in kind else 128 * 2**20
        except Exception:
            cap = 64 * 2**20          # conservative: fits v7x's 64 MiB / TC
    if cap >= 128 * 2**20:            # v5e / v6e: use the otherwise-idle VMEM
        return 72 * 2**20, 100 * 2**20
    return 22 * 2**20, 48 * 2**20     # v7x: leave per-TensorCore headroom


def _pick_tb(nc, h, ho, vmem_bytes_fn, budget_bytes, hard_cap):
    """Plane-batch size TB.

    Constraints: (tb*h) % 8 == 0 and (tb*ho) % 8 == 0 (sublane tiling quantum),
    vmem_bytes_fn(tb) <= soft budget, tb <= hard_cap, and tb < nc when nc >= 2
    so the grid has >= 2 steps (DMA pipelining + v7x megacore).  Prefers a
    divisor of nc (zero padding) when one exists near the top of the range.
    """
    def lcm(a, b):
        return a * b // math.gcd(a, b)

    m = lcm(8 // math.gcd(h, 8), 8 // math.gcd(ho, 8))
    cap = min(hard_cap, nc - 1 if nc >= 2 else nc)
    cands = [t for t in range(m, cap + 1, m) if vmem_bytes_fn(t) <= budget_bytes]
    if not cands:
        return m                      # minimal legal TB (block tiling rule)
    hi = cands[-1]
    divs = [t for t in cands if nc % t == 0 and t >= max(1, hi // 2)]
    return max(divs) if divs else hi


# ----------------------------------------------------------------------------
# Module wrapper
# ----------------------------------------------------------------------------
class Interpolate:
    """JAX/Pallas port of the PyTorch Interpolate module (NCHW, align_corners=False)."""

    def __init__(self, mode: str, scale_factor):
        self.mode = mode
        self.scale_factor = scale_factor

    def __call__(self, x: jnp.ndarray) -> jnp.ndarray:
        n, c, h, w = x.shape
        sf = self.scale_factor
        if isinstance(sf, (tuple, list)):
            sf_h, sf_w = float(sf[0]), float(sf[1])
        else:
            sf_h = sf_w = float(sf)
        # PyTorch: output size = floor(input * scale) in double precision.
        ho = int(math.floor(h * sf_h))
        wo = int(math.floor(w * sf_w))
        nc = n * c

        # bf16 inputs keep bf16 MXU operands; everything else computes in f32.
        cdtype = jnp.bfloat16 if x.dtype == jnp.bfloat16 else jnp.float32
        csize = np.dtype(cdtype).itemsize
        isize = x.dtype.itemsize

        wh_np = _interp_matrix(h, ho, self.mode, sf_h)            # (Ho, H)
        ww_np = _interp_matrix(w, wo, self.mode, sf_w)            # (Wo, W)
        wwt = jnp.asarray(ww_np.T, dtype=cdtype)                  # (W, Wo)

        budget, vmem_limit = _vmem_budget()
        fuse_rows = (h <= 64 and w <= 64)                         # small-plane regime

        if fuse_rows:
            def vmem_bytes(t):
                return (2 * t * h * w * isize                     # input tile (dbl-buf)
                        + 2 * t * ho * wo * isize                 # output tile (dbl-buf)
                        + 2 * (t * ho) * (t * h) * csize          # block-diag row weights
                        + w * wo * csize                          # column weights
                        + t * ho * w * 4                          # row-pass intermediate
                        + t * ho * wo * 4)                        # column-pass result
            hard_cap = max(1, 512 // max(h, 1))                   # MXU K ~256-512, bound FLOP blow-up
        else:
            def vmem_bytes(t):
                return (2 * t * h * w * isize
                        + 2 * t * ho * wo * isize
                        + ho * h * csize + w * wo * csize
                        + t * ho * w * csize                      # tmp scratch
                        + t * ho * wo * 4)
            hard_cap = 1024

        tb = _pick_tb(nc, h, ho, vmem_bytes, budget, hard_cap)
        pad_nc = int(math.ceil(nc / tb)) * tb
        grid = pad_nc // tb

        # Layout-preserving reshape to a 2-D slab; pad whole planes if needed.
        x2d = x.reshape(nc * h, w)
        if pad_nc != nc:
            x2d = jnp.pad(x2d, ((0, (pad_nc - nc) * h), (0, 0)))

        common = dict(
            out_shape=jax.ShapeDtypeStruct((pad_nc * ho, wo), x.dtype),
            compiler_params=pltpu.CompilerParams(
                dimension_semantics=("parallel",),
                vmem_limit_bytes=vmem_limit,
            ),
        )

        if fuse_rows:
            whbd = jnp.asarray(np.kron(np.eye(tb, dtype=np.float32), wh_np),
                               dtype=cdtype)                      # (TB*Ho, TB*H)
            out2d = pl.pallas_call(
                _fused_kernel(cdtype),
                grid_spec=pltpu.PrefetchScalarGridSpec(
                    num_scalar_prefetch=0,
                    grid=(grid,),
                    in_specs=[
                        pl.BlockSpec((tb * h, w), lambda i: (i, 0)),
                        pl.BlockSpec((tb * ho, tb * h), lambda i: (0, 0)),  # resident
                        pl.BlockSpec((w, wo), lambda i: (0, 0)),            # resident
                    ],
                    out_specs=pl.BlockSpec((tb * ho, wo), lambda i: (i, 0)),
                ),
                **common,
            )(x2d, whbd, wwt)
        else:
            wh = jnp.asarray(wh_np, dtype=cdtype)                 # (Ho, H)
            out2d = pl.pallas_call(
                _looped_kernel(tb, h, ho),
                grid_spec=pltpu.PrefetchScalarGridSpec(
                    num_scalar_prefetch=0,
                    grid=(grid,),
                    in_specs=[
                        pl.BlockSpec((tb * h, w), lambda i: (i, 0)),
                        pl.BlockSpec((ho, h), lambda i: (0, 0)),  # resident weight
                        pl.BlockSpec((w, wo), lambda i: (0, 0)),  # resident weight
                    ],
                    out_specs=pl.BlockSpec((tb * ho, wo), lambda i: (i, 0)),
                    scratch_shapes=[pltpu.VMEM((tb * ho, w), cdtype)],
                ),
                **common,
            )(x2d, wh, wwt)

        out2d = out2d[: nc * ho]                                  # drop padded planes
        return out2d.reshape(n, c, ho, wo)


# ----------------------------------------------------------------------------
# References & test
# ----------------------------------------------------------------------------
def _reference_separable(x, mode, scale_factor):
    """Plain-JAX reference using the same separable-matrix math."""
    n, c, h, w = x.shape
    ho = int(math.floor(h * float(scale_factor)))
    wo = int(math.floor(w * float(scale_factor)))
    wh = jnp.asarray(_interp_matrix(h, ho, mode, float(scale_factor)))
    ww = jnp.asarray(_interp_matrix(w, wo, mode, float(scale_factor)))
    return jnp.einsum("oh,nchw,pw->ncop", wh, x.astype(jnp.float32), ww).astype(x.dtype)


if __name__ == "__main__":
    key = jax.random.PRNGKey(0)
    k1, k2 = jax.random.split(key)

    # ---- bilinear, small planes (fused block-diagonal row-pass path) ----
    x = jax.random.normal(k1, (2, 4, 16, 16), dtype=jnp.float32)
    mod = Interpolate(mode="bilinear", scale_factor=2)
    y = jax.block_until_ready(mod(x))
    assert y.shape == (2, 4, 32, 32), y.shape
    y_sep = _reference_separable(x, "bilinear", 2)
    assert jnp.allclose(y, y_sep, atol=1e-5, rtol=1e-5)
    # Independent golden check: jax.image.resize half-pixel bilinear matches
    # PyTorch F.interpolate(mode='bilinear', align_corners=False) for upsampling.
    y_img = jax.image.resize(x, (2, 4, 32, 32), method="bilinear")
    assert jnp.allclose(y, y_img, atol=1e-4, rtol=1e-4)

    # ---- nearest (PyTorch legacy convention), small planes ----
    modn = Interpolate(mode="nearest", scale_factor=2)
    yn = jax.block_until_ready(modn(x))
    assert yn.shape == (2, 4, 32, 32), yn.shape
    idx = jnp.minimum(jnp.floor(jnp.arange(32) * 0.5).astype(jnp.int32), 15)
    yn_ref = x[:, :, idx, :][:, :, :, idx]
    assert jnp.allclose(yn, yn_ref)

    # ---- bilinear, larger planes (fori_loop row-pass path, tb < nc grid) ----
    x2 = jax.random.normal(k2, (1, 4, 96, 96), dtype=jnp.float32)
    y2 = jax.block_until_ready(Interpolate(mode="bilinear", scale_factor=2)(x2))
    assert y2.shape == (1, 4, 192, 192), y2.shape
    y2_ref = _reference_separable(x2, "bilinear", 2)
    assert jnp.allclose(y2, y2_ref, atol=1e-4, rtol=1e-4)

    print("KERNEL_OK")
</pallas_src>

<mosaic_0001>
module attributes {stable_mosaic.version = 11 : i64} {
  func.func @kernel(%arg0: i32, %arg1: memref<64x16xf32, #tpu.memory_space<vmem>>, %arg2: memref<128x64xf32, #tpu.memory_space<vmem>>, %arg3: memref<16x32xf32, #tpu.memory_space<vmem>>, %arg4: memref<128x32xf32, #tpu.memory_space<vmem>>) attributes {dimension_semantics = [#tpu.dimension_semantics<parallel>], iteration_bounds = array<i64: 2>, scalar_prefetch = 0 : i64, scratch_operands = 0 : i64, tpu.core_type = #tpu.core_type<tc>, window_params = [{transform_indices = @transform_0, window_bounds = array<i64: 64, 16>}, {pipeline_mode = #tpu.pipeline_mode<synchronous>, transform_indices = @transform_1, window_bounds = array<i64: 128, 64>}, {pipeline_mode = #tpu.pipeline_mode<synchronous>, transform_indices = @transform_2, window_bounds = array<i64: 16, 32>}, {transform_indices = @transform_3, window_bounds = array<i64: 128, 32>}]} {
    %c0 = arith.constant 0 : index
    %c0_0 = arith.constant 0 : index
    %0 = vector.load %arg2[%c0, %c0_0] : memref<128x64xf32, #tpu.memory_space<vmem>>, vector<128x64xf32>
    %c0_1 = arith.constant 0 : index
    %c0_2 = arith.constant 0 : index
    %1 = vector.load %arg1[%c0_1, %c0_2] : memref<64x16xf32, #tpu.memory_space<vmem>>, vector<64x16xf32>
    %cst = arith.constant dense<0.000000e+00> : vector<128x16xf32>
    %2 = tpu.matmul %0, %1, %cst {dimension_numbers = #tpu.dot_dimension_numbers<[1], [0], [0], [1], [0, 0, 1, 1], [], []>} : vector<128x64xf32>, vector<64x16xf32>, vector<128x16xf32> -> vector<128x16xf32>
    %c0_3 = arith.constant 0 : index
    %c0_4 = arith.constant 0 : index
    %3 = vector.load %arg3[%c0_3, %c0_4] : memref<16x32xf32, #tpu.memory_space<vmem>>, vector<16x32xf32>
    %cst_5 = arith.constant dense<0.000000e+00> : vector<128x32xf32>
    %4 = tpu.matmul %2, %3, %cst_5 {dimension_numbers = #tpu.dot_dimension_numbers<[1], [0], [0], [1], [0, 0, 1, 1], [], []>} : vector<128x16xf32>, vector<16x32xf32>, vector<128x32xf32> -> vector<128x32xf32>
    %c0_6 = arith.constant 0 : index
    %c0_7 = arith.constant 0 : index
    %5 = vector.load %arg4[%c0_6, %c0_7] : memref<128x32xf32, #tpu.memory_space<vmem>>, vector<128x32xf32>
    tpu.vector_store %arg4[%c0_6, %c0_7], %4 {strides = array<i32>} : memref<128x32xf32, #tpu.memory_space<vmem>>, vector<128x32xf32>,
    return
  }
  func.func @transform_0(%arg0: i32) -> (i32, i32) {
    %c0_i32 = arith.constant 0 : i32
    %c0_i32_0 = arith.constant 0 : i32
    return %arg0, %c0_i32 : i32, i32
  }
  func.func @transform_1(%arg0: i32) -> (i32, i32) {
    %c0_i32 = arith.constant 0 : i32
    %c0_i32_0 = arith.constant 0 : i32
    %c0_i32_1 = arith.constant 0 : i32
    return %c0_i32, %c0_i32_0 : i32, i32
  }
  func.func @transform_2(%arg0: i32) -> (i32, i32) {
    %c0_i32 = arith.constant 0 : i32
    %c0_i32_0 = arith.constant 0 : i32
    %c0_i32_1 = arith.constant 0 : i32
    return %c0_i32, %c0_i32_0 : i32, i32
  }
  func.func @transform_3(%arg0: i32) -> (i32, i32) {
    %c0_i32 = arith.constant 0 : i32
    %c0_i32_0 = arith.constant 0 : i32
    return %arg0, %c0_i32 : i32, i32
  }
}

</mosaic_0001>

<bundles_post_ra>
// kernel: tpu_custom_call.1
= control target key start
LH: loop header
LB: loop body
LE: loop exit
PB: predicated region body
PF: predicated region fallthrough
CT: control target
= control target key end

     0   :  { %s850_s12 = smov 0   ;;  %s991_s0 = inlined_call_operand.vmem [shape: f32[128,16], index: 0, kind: input, shape index: {}]   ;;  %s992_s1 = inlined_call_operand.vmem [shape: f32[128,64], index: 1, kind: input, shape index: {}]   ;;  %s993_s2 = inlined_call_operand.vmem [shape: f32[16,32], index: 2, kind: input, shape index: {}]   ;;  %s994_s3 = inlined_call_operand.vmem [shape: f32[256,32], index: 3, kind: output, shape index: {}]  }
   0x1 LB: > { %s661_s13 = sadd.s32 4294967295, %s828_s12   ;;  %p665_p0 = scmp.ge.s32.totalorder %s828_s12, 1  ;;  %s828_s12 = sphi %s850_s12, %s13_s12  }
   0x2   : > { %p138_p1 = scmp.lt.s32.totalorder %s828_s12, 3 }
   0x4   : > { %p139_p2 = pnand %p665_p0, %p138_p1 }
   0x5   : > { %s666_s14 = sshll.u32 (!%p139_p2), %s661_s13, 3  ;;  %s668_s30 = sshll.u32 (!%p139_p2), %s661_s13, 4 }
   0x6   : > { %142 = sbr.rel (%p139_p2) target bundleno = 451 (0x1c3), region = 32  ;;  %p163_p3 = scmp.lt.s32.totalorder (!%p139_p2), %s666_s14, 15 }
   0x7   : > { %p169_p4 = scmp.lt.s32.totalorder (!%p139_p2), %s668_s30, 31 }
   0xb   : > { %v174_v0 = vld [vmem:[%s992_s1] sm:$0xff]  ;;  %vm198_vm0 = vcmask 523264   ;;  %s996_s14 = smov (!%p163_p3, %s666_s14), 15  ;;  %v175_v9 = vld [vmem:[%s992_s1 + $0x8] sm:$0xff]  ;;  %v176_v10 = vld [vmem:[%s992_s1 + $0x10] sm:$0xff]  ;;  %vm394_vm1 = vcmask 130048  }
   0xc   : > { %762 = vmatprep.mubr.msk.f32.mxu0 %vm198_vm0, %v174_v0  ;;  %s667_s17 = sshll.u32 %s996_s14, 3  ;;  %v177_v11 = vld [vmem:[%s992_s1 + $0x18] sm:$0xff]  ;;  %v178_v12 = vld [vmem:[%s992_s1 + $0x20] sm:$0xff]  ;;  %v179_v13 = vld [vmem:[%s992_s1 + $0x28] sm:$0xff]  ;;  %s998_s30 = smov (!%p169_p4, %s668_s30), 31  ;;  %vm588_vm2 = vcmask 261120  }
   0xd   : > { %s166_s20 = scalar_lea.vmem %s991_s0, %s667_s17  ;;  %v180_v14 = vld [vmem:[%s992_s1 + $0x30] sm:$0xff]  ;;  %v181_v15 = vld [vmem:[%s992_s1 + $0x38] sm:$0xff]  ;;  %v182_v16 = vld [vmem:[%s992_s1 + $0x40] sm:$0xff]  ;;  %s669_s4 = sshll.u32 %s998_s30, 3 }
   0xe   : > { %v197_v1 = vld [vmem:[%s166_s20 + $0x38] sm:$0xff]  ;;  %v196_v2 = vld [vmem:[%s166_s20 + $0x30] sm:$0xff]  ;;  %v195_v3 = vld [vmem:[%s166_s20 + $0x28] sm:$0xff]  ;;  %s954_s7 = scalar_lea.vmem %s994_s3, %s669_s4 }
   0xf   : > { %746 = vmatprep.subr.mxu0 %v197_v1  ;;  %v194_v4 = vld [vmem:[%s166_s20 + $0x20] sm:$0xff]  ;;  %v193_v5 = vld [vmem:[%s166_s20 + $0x18] sm:$0xff]  ;;  %v192_v6 = vld [vmem:[%s166_s20 + $0x10] sm:$0xff] }
  0x10   : > { %747 = vmatpush3.msra.mxu0 %v197_v1  ;;  %v191_v7 = vld [vmem:[%s166_s20 + $0x8] sm:$0xff]  ;;  %v190_v8 = vld [vmem:[%s166_s20] sm:$0xff]  ;;  %v184_v18 = vld [vmem:[%s992_s1 + $0x50] sm:$0xff] }
  0x11   : > { %748 = vmatprep.subr.mxu0 %v196_v2  ;;  %v183_v17 = vld [vmem:[%s992_s1 + $0x48] sm:$0xff]  ;;  %v185_v19 = vld [vmem:[%s992_s1 + $0x58] sm:$0xff]  ;;  %v186_v20 = vld [vmem:[%s992_s1 + $0x60] sm:$0xff] }
  0x12   : > { %749 = vmatpush3.msra.mxu0 %v196_v2  ;;  %v187_v21 = vld [vmem:[%s992_s1 + $0x68] sm:$0xff]  ;;  %v188_v22 = vld [vmem:[%s992_s1 + $0x70] sm:$0xff]  ;;  %v189_v23 = vld [vmem:[%s992_s1 + $0x78] sm:$0xff] }
  0x13   : > { %750 = vmatprep.subr.mxu0 %v195_v3  ;;  %v393_v24 = vld [vmem:[%s993_s2 + $0x8] sm:$0xff]  ;;  %v392_v25 = vld [vmem:[%s993_s2] sm:$0xff] }
  0x14   : > { %751 = vmatpush3.msra.mxu0 %v195_v3  ;;  %786 = vmatprep.subr.mxu1 %v393_v24 }
  0x15   : > { %752 = vmatprep.subr.mxu0 %v194_v4  ;;  %787 = vmatpush3.msra.mxu1 %v393_v24 }
  0x16   : > { %753 = vmatpush3.msra.mxu0 %v194_v4  ;;  %788 = vmatprep.subr.mxu1 %v392_v25 }
  0x17   : > { %754 = vmatprep.subr.mxu0 %v193_v5  ;;  %789 = vmatpush3.msra.mxu1 %v392_v25 }
  0x18   : > { %755 = vmatpush3.msra.mxu0 %v193_v5 }
  0x19   : > { %756 = vmatprep.subr.mxu0 %v192_v6 }
  0x1a   : > { %757 = vmatpush3.msra.mxu0 %v192_v6 }
  0x1b   : > { %758 = vmatprep.subr.mxu0 %v191_v7 }
  0x1c   : > { %759 = vmatpush3.msra.mxu0 %v191_v7 }
  0x1d   : > { %760 = vmatprep.subr.mxu0 %v190_v8 }
  0x1e   : > { %761 = vmatpush3.msra.mxu0 %v190_v8 }
  0x1f   : > { %763 = vmatmul.mubr.msk.f32.vlgmr.msra.gmra.mxu0 %vm198_vm0, %v175_v9 }
  0x20   : > { %765 = vmatprep.mubr.msk.f32.mxu0 %vm198_vm0, %v176_v10 }
  0x23   : > { %766 = vmatmul.mubr.msk.f32.gmra.mxu0 %vm198_vm0, %v177_v11 }
  0x24   : > { %768 = vmatprep.mubr.msk.f32.mxu0 %vm198_vm0, %v178_v12 }
  0x27   : > { %769 = vmatmul.mubr.msk.f32.gmra.mxu0 %vm198_vm0, %v179_v13 }
  0x28   : > { %771 = vmatprep.mubr.msk.f32.mxu0 %vm198_vm0, %v180_v14 }
  0x2b   : > { %772 = vmatmul.mubr.msk.f32.gmra.mxu0 %vm198_vm0, %v181_v15 }
  0x2c   : > { %774 = vmatprep.mubr.msk.f32.mxu0 %vm198_vm0, %v182_v16 }
  0x2f   : > { %775 = vmatmul.mubr.msk.f32.gmra.mxu0 %vm198_vm0, %v183_v17 }
  0x30   : > { %777 = vmatprep.mubr.msk.f32.mxu0 %vm198_vm0, %v184_v18 }
  0x33   : > { %778 = vmatmul.mubr.msk.f32.gmra.mxu0 %vm198_vm0, %v185_v19 }
  0x34   : > { %780 = vmatprep.mubr.msk.f32.mxu0 %vm198_vm0, %v186_v20 }
  0x37   : > { %781 = vmatmul.mubr.msk.f32.gmra.mxu0 %vm198_vm0, %v187_v21 }
  0x38   : > { %783 = vmatprep.mubr.msk.f32.mxu0 %vm198_vm0, %v188_v22 }
  0x3b   : > { %784 = vmatmul.mubr.msk.f32.gmra.mxu0 %vm198_vm0, %v189_v23 }
  0xdf   : > { %v764_v26 = vpop.f32.mrf.mxu0 }
  0xe1   : > { %v313_v27 = vpop.f32.mrf.mxu0 }
  0xe2   : > { %790 = vmatprep.mubr.msk.f32.mxu1 %vm394_vm1, %v313_v27 }
  0xe3   : > { %v767_v28 = vpop.f32.mrf.mxu0  ;;  %791 = vmatmul.mubr.msk.f32.vlgmr.msra.gmra.mxu1 %vm394_vm1, %v764_v26 }
  0xe5   : > { %v323_v29 = vpop.f32.mrf.mxu0 }
  0xe6   : > { %793 = vmatprep.mubr.msk.f32.mxu1 %vm394_vm1, %v323_v29 }
  0xe7   : > { %v770_v30 = vpop.f32.mrf.mxu0  ;;  %794 = vmatmul.mubr.msk.f32.gmra.mxu1 %vm394_vm1, %v767_v28 }
  0xe9   : > { %v333_v31 = vpop.f32.mrf.mxu0 }
  0xea   : > { %796 = vmatprep.mubr.msk.f32.mxu1 %vm394_vm1, %v333_v31 }
  0xeb   : > { %v773_v32 = vpop.f32.mrf.mxu0  ;;  %797 = vmatmul.mubr.msk.f32.gmra.mxu1 %vm394_vm1, %v770_v30 }
  0xed   : > { %v343_v33 = vpop.f32.mrf.mxu0 }
  0xee   : > { %799 = vmatprep.mubr.msk.f32.mxu1 %vm394_vm1, %v343_v33 }
  0xef   : > { %v776_v34 = vpop.f32.mrf.mxu0  ;;  %800 = vmatmul.mubr.msk.f32.gmra.mxu1 %vm394_vm1, %v773_v32 }
  0xf1   : > { %v353_v35 = vpop.f32.mrf.mxu0 }
  0xf2   : > { %802 = vmatprep.mubr.msk.f32.mxu1 %vm394_vm1, %v353_v35 }
  0xf3   : > { %v779_v36 = vpop.f32.mrf.mxu0  ;;  %803 = vmatmul.mubr.msk.f32.gmra.mxu1 %vm394_vm1, %v776_v34 }
  0xf5   : > { %v363_v37 = vpop.f32.mrf.mxu0 }
  0xf6   : > { %805 = vmatprep.mubr.msk.f32.mxu1 %vm394_vm1, %v363_v37 }
  0xf7   : > { %v782_v38 = vpop.f32.mrf.mxu0  ;;  %806 = vmatmul.mubr.msk.f32.gmra.mxu1 %vm394_vm1, %v779_v36 }
  0xf9   : > { %v373_v39 = vpop.f32.mrf.mxu0 }
  0xfa   : > { %808 = vmatprep.mubr.msk.f32.mxu1 %vm394_vm1, %v373_v39 }
  0xfb   : > { %v785_v40 = vpop.f32.mrf.mxu0  ;;  %809 = vmatmul.mubr.msk.f32.gmra.mxu1 %vm394_vm1, %v782_v38 }
  0xfd   : > { %v383_v41 = vpop.f32.mrf.mxu0 }
  0xfe   : > { %811 = vmatprep.mubr.msk.f32.mxu1 %vm394_vm1, %v383_v41 }
  0xff   : > { %812 = vmatmul.mubr.msk.f32.gmra.mxu1 %vm394_vm1, %v785_v40 }
 0x1a3   : > { %v792_v42 = vpop.f32.mrf.mxu1 }
 0x1a4   : > { %590 = vst.msk [vmem:[%s954_s7 + $0x8] sm:$0xff] %vm588_vm2, %v792_v42 }
 0x1a5   : > { %v509_v43 = vpop.f32.mrf.mxu1 }
 0x1a6   : > { %589 = vst.msk [vmem:[%s954_s7] sm:$0xff] %vm588_vm2, %v509_v43 }
 0x1a7   : > { %v795_v44 = vpop.f32.mrf.mxu1 }
 0x1a8   : > { %592 = vst.msk [vmem:[%s954_s7 + $0x18] sm:$0xff] %vm588_vm2, %v795_v44 }
 0x1a9   : > { %v519_v45 = vpop.f32.mrf.mxu1 }
 0x1aa   : > { %591 = vst.msk [vmem:[%s954_s7 + $0x10] sm:$0xff] %vm588_vm2, %v519_v45 }
 0x1ab   : > { %v798_v46 = vpop.f32.mrf.mxu1 }
 0x1ac   : > { %594 = vst.msk [vmem:[%s954_s7 + $0x28] sm:$0xff] %vm588_vm2, %v798_v46 }
 0x1ad   : > { %v529_v47 = vpop.f32.mrf.mxu1 }
 0x1ae   : > { %593 = vst.msk [vmem:[%s954_s7 + $0x20] sm:$0xff] %vm588_vm2, %v529_v47 }
 0x1af   : > { %v801_v48 = vpop.f32.mrf.mxu1 }
 0x1b0   : > { %596 = vst.msk [vmem:[%s954_s7 + $0x38] sm:$0xff] %vm588_vm2, %v801_v48 }
 0x1b1   : > { %v539_v49 = vpop.f32.mrf.mxu1 }
 0x1b2   : > { %595 = vst.msk [vmem:[%s954_s7 + $0x30] sm:$0xff] %vm588_vm2, %v539_v49 }
 0x1b3   : > { %v804_v50 = vpop.f32.mrf.mxu1 }
 0x1b4   : > { %598 = vst.msk [vmem:[%s954_s7 + $0x48] sm:$0xff] %vm588_vm2, %v804_v50 }
 0x1b5   : > { %v549_v51 = vpop.f32.mrf.mxu1 }
 0x1b6   : > { %597 = vst.msk [vmem:[%s954_s7 + $0x40] sm:$0xff] %vm588_vm2, %v549_v51 }
 0x1b7   : > { %v807_v52 = vpop.f32.mrf.mxu1 }
 0x1b8   : > { %600 = vst.msk [vmem:[%s954_s7 + $0x58] sm:$0xff] %vm588_vm2, %v807_v52 }
 0x1b9   : > { %v559_v53 = vpop.f32.mrf.mxu1 }
 0x1ba   : > { %599 = vst.msk [vmem:[%s954_s7 + $0x50] sm:$0xff] %vm588_vm2, %v559_v53 }
 0x1bb   : > { %v810_v54 = vpop.f32.mrf.mxu1 }
 0x1bc   : > { %602 = vst.msk [vmem:[%s954_s7 + $0x68] sm:$0xff] %vm588_vm2, %v810_v54 }
 0x1bd   : > { %v569_v55 = vpop.f32.mrf.mxu1 }
 0x1be   : > { %601 = vst.msk [vmem:[%s954_s7 + $0x60] sm:$0xff] %vm588_vm2, %v569_v55 }
 0x1bf   : > { %v813_v56 = vpop.f32.mrf.mxu1 }
 0x1c0   : > { %604 = vst.msk [vmem:[%s954_s7 + $0x78] sm:$0xff] %vm588_vm2, %v813_v56 }
 0x1c1   : > { %v579_v57 = vpop.f32.mrf.mxu1 }
 0x1c2   : > { %603 = vst.msk [vmem:[%s954_s7 + $0x70] sm:$0xff] %vm588_vm2, %v579_v57 }
 0x1c3 PF: > { %s13_s12 = sadd.s32 1, %s828_s12  }
 0x1c4   : > { %p10_p5 = scmp.ge.s32.totalorder %s13_s12, 4  }
 0x1c6   :  { %12 = sbr.rel (!%p10_p5) target bundleno = 1 (0x1), region = 62 }

</bundles_post_ra>
